<compile_context>
chip_gen: v7x
topology: tpu7x:2x2x1
jax: 0.10.0
libtpu: 0.0.40
codegen_flags: <defaults>
</compile_context>

<pallas_src>
import math

import jax
import jax.numpy as jnp
from jax.experimental import pallas as pl
from jax.experimental.pallas import tpu as pltpu


def _diag_cov_kernel_flat(x_ref, o_ref):
    """x_ref: (TB, D) raw diagonal; o_ref: (TB, D*D) lane-dense flattened diag_embed."""
    d = x_ref.shape[-1]
    ev = jnp.exp(x_ref[...].astype(jnp.float32))          # (TB, D); EUP, f32

    # Replicate ev along lanes D times: ev_rep[b, i*D + j] = ev[b, j].
    ev_rep = jnp.concatenate([ev] * d, axis=-1)            # (TB, D*D)

    # Flat identity mask: flat position k = i*D + j is diagonal iff j == i,
    # i.e. lane-block i keeps lane i only.  Built by concatenating one-hot rows
    # (no integer div/mod, no reshape of non-replicated data).
    lane = jax.lax.broadcasted_iota(jnp.int32, (1, d), 1)  # (1, D)
    eye_flat = jnp.concatenate(
        [(lane == i).astype(jnp.float32) for i in range(d)], axis=-1)  # (1, D*D)

    # where (not multiply) preserves exp-overflow semantics (inf on diag, 0 off-diag).
    out = jnp.where(eye_flat != 0, ev_rep, jnp.float32(0.0))           # (TB, D*D)
    o_ref[...] = out.astype(o_ref.dtype)                   # single lane-dense store


def _diag_cov_kernel_dense(x_ref, o_ref):
    """x_ref: (TB, D) raw diagonal; o_ref: (TB, D, D); D is a multiple of 128."""
    d = x_ref.shape[-1]
    ev = jnp.exp(x_ref[...].astype(jnp.float32))           # (TB, D)
    row = jax.lax.broadcasted_iota(jnp.int32, (d, d), 0)
    col = jax.lax.broadcasted_iota(jnp.int32, (d, d), 1)
    eye = row == col                                       # (D, D), once per grid step
    out = jnp.where(eye[None, :, :], ev[:, None, :], jnp.float32(0.0))
    o_ref[...] = out.astype(o_ref.dtype)


def _pick_batch_tile(batch: int, d: int, itemsize: int, target_tile_bytes: int) -> int:
    """Largest batch tile whose output block is ~target bytes, sublane-aligned."""
    row_bytes = d * d * itemsize
    tb = max(1, target_tile_bytes // row_bytes)
    if tb >= batch:
        return batch
    align = max(8, 32 // itemsize)          # 8 rows for f32, 16 for bf16 (packed sublanes)
    tb = max(align, (tb // align) * align)
    return min(tb, batch)


def diagonal_covariance(raw_diagonal: jax.Array,
                        *,
                        target_tile_bytes: int = 4 * 1024 * 1024) -> jax.Array:
    """Pallas TPU equivalent of DiagonalCovarianceLayer.forward: diag_embed(exp(x))."""
    orig_shape = raw_diagonal.shape
    d = orig_shape[-1]
    lead = orig_shape[:-1]
    batch = math.prod(lead) if lead else 1
    dtype = raw_diagonal.dtype
    itemsize = jnp.dtype(dtype).itemsize

    x2d = raw_diagonal.reshape(batch, d)
    tb = _pick_batch_tile(batch, d, itemsize, target_tile_bytes)
    grid = (pl.cdiv(batch, tb),)

    cost = pl.CostEstimate(
        flops=2 * batch * d * d,                 # mask compare + select per output element
        transcendentals=batch * d,               # exp
        bytes_accessed=(batch * d + batch * d * d) * itemsize,
    )
    compiler_params = pltpu.CompilerParams(
        dimension_semantics=("parallel",),       # megacore-shard the batch axis on v7x
        vmem_limit_bytes=32 * 1024 * 1024,
    )

    if d % 128 == 0:
        # Output last dim already lane-dense: write (TB, D, D) blocks directly.
        out = pl.pallas_call(
            _diag_cov_kernel_dense,
            out_shape=jax.ShapeDtypeStruct((batch, d, d), dtype),
            grid=grid,
            in_specs=[pl.BlockSpec((tb, d), lambda i: (i, 0))],
            out_specs=pl.BlockSpec((tb, d, d), lambda i: (i, 0, 0)),
            compiler_params=compiler_params,
            cost_estimate=cost,
        )(x2d)
        return out.reshape(*lead, d, d)

    # D not 128-aligned (typical small D): write a lane-dense flattened (B, D*D)
    # output and un-flatten in the wrapper (free metadata reshape in XLA).
    # TODO(synk): very large non-128-aligned D would bloat the unrolled lane concat;
    #             such shapes should use a D-tiled dense-path grid instead.
    out_flat = pl.pallas_call(
        _diag_cov_kernel_flat,
        out_shape=jax.ShapeDtypeStruct((batch, d * d), dtype),
        grid=grid,
        in_specs=[pl.BlockSpec((tb, d), lambda i: (i, 0))],
        out_specs=pl.BlockSpec((tb, d * d), lambda i: (i, 0)),
        compiler_params=compiler_params,
        cost_estimate=cost,
    )(x2d)
    return out_flat.reshape(*lead, d, d)


def _reference(raw_diagonal: jax.Array) -> jax.Array:
    d = raw_diagonal.shape[-1]
    eye = jnp.eye(d, dtype=raw_diagonal.dtype)
    return jnp.exp(raw_diagonal)[..., :, None] * eye


if __name__ == "__main__":
    key = jax.random.PRNGKey(0)
    k1, k2, k3 = jax.random.split(key, 3)

    # 1) Typical small case: (batch=2, mixture=4, D=32) -> (2, 4, 32, 32); flat path.
    x1 = jax.random.normal(k1, (2, 4, 32), dtype=jnp.float32)
    c1 = jax.block_until_ready(diagonal_covariance(x1))
    assert c1.shape == (2, 4, 32, 32)
    assert jnp.allclose(c1, _reference(x1), atol=1e-6, rtol=1e-6)

    # 2) Batch not a multiple of the tile -> exercises the grid + masked tail writeback.
    x2 = jax.random.normal(k2, (15, 32), dtype=jnp.float32)
    c2 = jax.block_until_ready(
        diagonal_covariance(x2, target_tile_bytes=8 * 32 * 32 * 4))
    assert c2.shape == (15, 32, 32)
    assert jnp.allclose(c2, _reference(x2), atol=1e-6, rtol=1e-6)

    # 3) 128-aligned D -> exercises the already-lane-dense (TB, D, D) path.
    x3 = jax.random.normal(k3, (2, 128), dtype=jnp.float32)
    c3 = jax.block_until_ready(diagonal_covariance(x3))
    assert c3.shape == (2, 128, 128)
    assert jnp.allclose(c3, _reference(x3), atol=1e-6, rtol=1e-6)

    print("KERNEL_OK")
</pallas_src>

<mosaic_0001>
module attributes {stable_mosaic.version = 11 : i64} {
  func.func @_diag_cov_kernel_flat(%arg0: i32, %arg1: memref<8x32xf32, #tpu.memory_space<vmem>>, %arg2: memref<8x1024xf32, #tpu.memory_space<vmem>>) attributes {dimension_semantics = [#tpu.dimension_semantics<parallel>], iteration_bounds = array<i64: 1>, scalar_prefetch = 0 : i64, scratch_operands = 0 : i64, tpu.core_type = #tpu.core_type<tc>, window_params = [{transform_indices = @transform_0, window_bounds = array<i64: 8, 32>}, {transform_indices = @transform_1, window_bounds = array<i64: 8, 1024>}]} {
    %c0 = arith.constant 0 : index
    %c0_0 = arith.constant 0 : index
    %0 = vector.load %arg1[%c0, %c0_0] : memref<8x32xf32, #tpu.memory_space<vmem>>, vector<8x32xf32>
    %1 = math.exp %0 : vector<8x32xf32>
    %2 = tpu.concatenate %1, %1, %1, %1, %1, %1, %1, %1, %1, %1, %1, %1, %1, %1, %1, %1 in 1 : vector<8x32xf32>, vector<8x32xf32>, vector<8x32xf32>, vector<8x32xf32>, vector<8x32xf32>, vector<8x32xf32>, vector<8x32xf32>, vector<8x32xf32>, vector<8x32xf32>, vector<8x32xf32>, vector<8x32xf32>, vector<8x32xf32>, vector<8x32xf32>, vector<8x32xf32>, vector<8x32xf32>, vector<8x32xf32> -> vector<8x512xf32>
    %3 = tpu.concatenate %1, %1, %1, %1, %1, %1, %1, %1, %1, %1, %1, %1, %1, %1, %1, %1 in 1 : vector<8x32xf32>, vector<8x32xf32>, vector<8x32xf32>, vector<8x32xf32>, vector<8x32xf32>, vector<8x32xf32>, vector<8x32xf32>, vector<8x32xf32>, vector<8x32xf32>, vector<8x32xf32>, vector<8x32xf32>, vector<8x32xf32>, vector<8x32xf32>, vector<8x32xf32>, vector<8x32xf32>, vector<8x32xf32> -> vector<8x512xf32>
    %4 = tpu.concatenate %2, %3 in 1 : vector<8x512xf32>, vector<8x512xf32> -> vector<8x1024xf32>
    %5 = tpu.iota {dimensions = array<i32: 1>} : vector<1x32xi32>
    %c0_i32 = arith.constant 0 : i32
    %6 = vector.broadcast %c0_i32 : i32 to vector<1x32xi32>
    %7 = arith.cmpi eq, %5, %6 : vector<1x32xi32>
    %8 = arith.extui %7 : vector<1x32xi1> to vector<1x32xi32>
    %9 = arith.sitofp %8 : vector<1x32xi32> to vector<1x32xf32>
    %c1_i32 = arith.constant 1 : i32
    %10 = vector.broadcast %c1_i32 : i32 to vector<1x32xi32>
    %11 = arith.cmpi eq, %5, %10 : vector<1x32xi32>
    %12 = arith.extui %11 : vector<1x32xi1> to vector<1x32xi32>
    %13 = arith.sitofp %12 : vector<1x32xi32> to vector<1x32xf32>
    %c2_i32 = arith.constant 2 : i32
    %14 = vector.broadcast %c2_i32 : i32 to vector<1x32xi32>
    %15 = arith.cmpi eq, %5, %14 : vector<1x32xi32>
    %16 = arith.extui %15 : vector<1x32xi1> to vector<1x32xi32>
    %17 = arith.sitofp %16 : vector<1x32xi32> to vector<1x32xf32>
    %c3_i32 = arith.constant 3 : i32
    %18 = vector.broadcast %c3_i32 : i32 to vector<1x32xi32>
    %19 = arith.cmpi eq, %5, %18 : vector<1x32xi32>
    %20 = arith.extui %19 : vector<1x32xi1> to vector<1x32xi32>
    %21 = arith.sitofp %20 : vector<1x32xi32> to vector<1x32xf32>
    %c4_i32 = arith.constant 4 : i32
    %22 = vector.broadcast %c4_i32 : i32 to vector<1x32xi32>
    %23 = arith.cmpi eq, %5, %22 : vector<1x32xi32>
    %24 = arith.extui %23 : vector<1x32xi1> to vector<1x32xi32>
    %25 = arith.sitofp %24 : vector<1x32xi32> to vector<1x32xf32>
    %c5_i32 = arith.constant 5 : i32
    %26 = vector.broadcast %c5_i32 : i32 to vector<1x32xi32>
    %27 = arith.cmpi eq, %5, %26 : vector<1x32xi32>
    %28 = arith.extui %27 : vector<1x32xi1> to vector<1x32xi32>
    %29 = arith.sitofp %28 : vector<1x32xi32> to vector<1x32xf32>
    %c6_i32 = arith.constant 6 : i32
    %30 = vector.broadcast %c6_i32 : i32 to vector<1x32xi32>
    %31 = arith.cmpi eq, %5, %30 : vector<1x32xi32>
    %32 = arith.extui %31 : vector<1x32xi1> to vector<1x32xi32>
    %33 = arith.sitofp %32 : vector<1x32xi32> to vector<1x32xf32>
    %c7_i32 = arith.constant 7 : i32
    %34 = vector.broadcast %c7_i32 : i32 to vector<1x32xi32>
    %35 = arith.cmpi eq, %5, %34 : vector<1x32xi32>
    %36 = arith.extui %35 : vector<1x32xi1> to vector<1x32xi32>
    %37 = arith.sitofp %36 : vector<1x32xi32> to vector<1x32xf32>
    %c8_i32 = arith.constant 8 : i32
    %38 = vector.broadcast %c8_i32 : i32 to vector<1x32xi32>
    %39 = arith.cmpi eq, %5, %38 : vector<1x32xi32>
    %40 = arith.extui %39 : vector<1x32xi1> to vector<1x32xi32>
    %41 = arith.sitofp %40 : vector<1x32xi32> to vector<1x32xf32>
    %c9_i32 = arith.constant 9 : i32
    %42 = vector.broadcast %c9_i32 : i32 to vector<1x32xi32>
    %43 = arith.cmpi eq, %5, %42 : vector<1x32xi32>
    %44 = arith.extui %43 : vector<1x32xi1> to vector<1x32xi32>
    %45 = arith.sitofp %44 : vector<1x32xi32> to vector<1x32xf32>
    %c10_i32 = arith.constant 10 : i32
    %46 = vector.broadcast %c10_i32 : i32 to vector<1x32xi32>
    %47 = arith.cmpi eq, %5, %46 : vector<1x32xi32>
    %48 = arith.extui %47 : vector<1x32xi1> to vector<1x32xi32>
    %49 = arith.sitofp %48 : vector<1x32xi32> to vector<1x32xf32>
    %c11_i32 = arith.constant 11 : i32
    %50 = vector.broadcast %c11_i32 : i32 to vector<1x32xi32>
    %51 = arith.cmpi eq, %5, %50 : vector<1x32xi32>
    %52 = arith.extui %51 : vector<1x32xi1> to vector<1x32xi32>
    %53 = arith.sitofp %52 : vector<1x32xi32> to vector<1x32xf32>
    %c12_i32 = arith.constant 12 : i32
    %54 = vector.broadcast %c12_i32 : i32 to vector<1x32xi32>
    %55 = arith.cmpi eq, %5, %54 : vector<1x32xi32>
    %56 = arith.extui %55 : vector<1x32xi1> to vector<1x32xi32>
    %57 = arith.sitofp %56 : vector<1x32xi32> to vector<1x32xf32>
    %c13_i32 = arith.constant 13 : i32
    %58 = vector.broadcast %c13_i32 : i32 to vector<1x32xi32>
    %59 = arith.cmpi eq, %5, %58 : vector<1x32xi32>
    %60 = arith.extui %59 : vector<1x32xi1> to vector<1x32xi32>
    %61 = arith.sitofp %60 : vector<1x32xi32> to vector<1x32xf32>
    %c14_i32 = arith.constant 14 : i32
    %62 = vector.broadcast %c14_i32 : i32 to vector<1x32xi32>
    %63 = arith.cmpi eq, %5, %62 : vector<1x32xi32>
    %64 = arith.extui %63 : vector<1x32xi1> to vector<1x32xi32>
    %65 = arith.sitofp %64 : vector<1x32xi32> to vector<1x32xf32>
    %c15_i32 = arith.constant 15 : i32
    %66 = vector.broadcast %c15_i32 : i32 to vector<1x32xi32>
    %67 = arith.cmpi eq, %5, %66 : vector<1x32xi32>
    %68 = arith.extui %67 : vector<1x32xi1> to vector<1x32xi32>
    %69 = arith.sitofp %68 : vector<1x32xi32> to vector<1x32xf32>
    %c16_i32 = arith.constant 16 : i32
    %70 = vector.broadcast %c16_i32 : i32 to vector<1x32xi32>
    %71 = arith.cmpi eq, %5, %70 : vector<1x32xi32>
    %72 = arith.extui %71 : vector<1x32xi1> to vector<1x32xi32>
    %73 = arith.sitofp %72 : vector<1x32xi32> to vector<1x32xf32>
    %c17_i32 = arith.constant 17 : i32
    %74 = vector.broadcast %c17_i32 : i32 to vector<1x32xi32>
    %75 = arith.cmpi eq, %5, %74 : vector<1x32xi32>
    %76 = arith.extui %75 : vector<1x32xi1> to vector<1x32xi32>
    %77 = arith.sitofp %76 : vector<1x32xi32> to vector<1x32xf32>
    %c18_i32 = arith.constant 18 : i32
    %78 = vector.broadcast %c18_i32 : i32 to vector<1x32xi32>
    %79 = arith.cmpi eq, %5, %78 : vector<1x32xi32>
    %80 = arith.extui %79 : vector<1x32xi1> to vector<1x32xi32>
    %81 = arith.sitofp %80 : vector<1x32xi32> to vector<1x32xf32>
    %c19_i32 = arith.constant 19 : i32
    %82 = vector.broadcast %c19_i32 : i32 to vector<1x32xi32>
    %83 = arith.cmpi eq, %5, %82 : vector<1x32xi32>
    %84 = arith.extui %83 : vector<1x32xi1> to vector<1x32xi32>
    %85 = arith.sitofp %84 : vector<1x32xi32> to vector<1x32xf32>
    %c20_i32 = arith.constant 20 : i32
    %86 = vector.broadcast %c20_i32 : i32 to vector<1x32xi32>
    %87 = arith.cmpi eq, %5, %86 : vector<1x32xi32>
    %88 = arith.extui %87 : vector<1x32xi1> to vector<1x32xi32>
    %89 = arith.sitofp %88 : vector<1x32xi32> to vector<1x32xf32>
    %c21_i32 = arith.constant 21 : i32
    %90 = vector.broadcast %c21_i32 : i32 to vector<1x32xi32>
    %91 = arith.cmpi eq, %5, %90 : vector<1x32xi32>
    %92 = arith.extui %91 : vector<1x32xi1> to vector<1x32xi32>
    %93 = arith.sitofp %92 : vector<1x32xi32> to vector<1x32xf32>
    %c22_i32 = arith.constant 22 : i32
    %94 = vector.broadcast %c22_i32 : i32 to vector<1x32xi32>
    %95 = arith.cmpi eq, %5, %94 : vector<1x32xi32>
    %96 = arith.extui %95 : vector<1x32xi1> to vector<1x32xi32>
    %97 = arith.sitofp %96 : vector<1x32xi32> to vector<1x32xf32>
    %c23_i32 = arith.constant 23 : i32
    %98 = vector.broadcast %c23_i32 : i32 to vector<1x32xi32>
    %99 = arith.cmpi eq, %5, %98 : vector<1x32xi32>
    %100 = arith.extui %99 : vector<1x32xi1> to vector<1x32xi32>
    %101 = arith.sitofp %100 : vector<1x32xi32> to vector<1x32xf32>
    %c24_i32 = arith.constant 24 : i32
    %102 = vector.broadcast %c24_i32 : i32 to vector<1x32xi32>
    %103 = arith.cmpi eq, %5, %102 : vector<1x32xi32>
    %104 = arith.extui %103 : vector<1x32xi1> to vector<1x32xi32>
    %105 = arith.sitofp %104 : vector<1x32xi32> to vector<1x32xf32>
    %c25_i32 = arith.constant 25 : i32
    %106 = vector.broadcast %c25_i32 : i32 to vector<1x32xi32>
    %107 = arith.cmpi eq, %5, %106 : vector<1x32xi32>
    %108 = arith.extui %107 : vector<1x32xi1> to vector<1x32xi32>
    %109 = arith.sitofp %108 : vector<1x32xi32> to vector<1x32xf32>
    %c26_i32 = arith.constant 26 : i32
    %110 = vector.broadcast %c26_i32 : i32 to vector<1x32xi32>
    %111 = arith.cmpi eq, %5, %110 : vector<1x32xi32>
    %112 = arith.extui %111 : vector<1x32xi1> to vector<1x32xi32>
    %113 = arith.sitofp %112 : vector<1x32xi32> to vector<1x32xf32>
    %c27_i32 = arith.constant 27 : i32
    %114 = vector.broadcast %c27_i32 : i32 to vector<1x32xi32>
    %115 = arith.cmpi eq, %5, %114 : vector<1x32xi32>
    %116 = arith.extui %115 : vector<1x32xi1> to vector<1x32xi32>
    %117 = arith.sitofp %116 : vector<1x32xi32> to vector<1x32xf32>
    %c28_i32 = arith.constant 28 : i32
    %118 = vector.broadcast %c28_i32 : i32 to vector<1x32xi32>
    %119 = arith.cmpi eq, %5, %118 : vector<1x32xi32>
    %120 = arith.extui %119 : vector<1x32xi1> to vector<1x32xi32>
    %121 = arith.sitofp %120 : vector<1x32xi32> to vector<1x32xf32>
    %c29_i32 = arith.constant 29 : i32
    %122 = vector.broadcast %c29_i32 : i32 to vector<1x32xi32>
    %123 = arith.cmpi eq, %5, %122 : vector<1x32xi32>
    %124 = arith.extui %123 : vector<1x32xi1> to vector<1x32xi32>
    %125 = arith.sitofp %124 : vector<1x32xi32> to vector<1x32xf32>
    %c30_i32 = arith.constant 30 : i32
    %126 = vector.broadcast %c30_i32 : i32 to vector<1x32xi32>
    %127 = arith.cmpi eq, %5, %126 : vector<1x32xi32>
    %128 = arith.extui %127 : vector<1x32xi1> to vector<1x32xi32>
    %129 = arith.sitofp %128 : vector<1x32xi32> to vector<1x32xf32>
    %c31_i32 = arith.constant 31 : i32
    %130 = vector.broadcast %c31_i32 : i32 to vector<1x32xi32>
    %131 = arith.cmpi eq, %5, %130 : vector<1x32xi32>
    %132 = arith.extui %131 : vector<1x32xi1> to vector<1x32xi32>
    %133 = arith.sitofp %132 : vector<1x32xi32> to vector<1x32xf32>
    %134 = tpu.concatenate %9, %13, %17, %21, %25, %29, %33, %37, %41, %45, %49, %53, %57, %61, %65, %69 in 1 : vector<1x32xf32>, vector<1x32xf32>, vector<1x32xf32>, vector<1x32xf32>, vector<1x32xf32>, vector<1x32xf32>, vector<1x32xf32>, vector<1x32xf32>, vector<1x32xf32>, vector<1x32xf32>, vector<1x32xf32>, vector<1x32xf32>, vector<1x32xf32>, vector<1x32xf32>, vector<1x32xf32>, vector<1x32xf32> -> vector<1x512xf32>
    %135 = tpu.concatenate %73, %77, %81, %85, %89, %93, %97, %101, %105, %109, %113, %117, %121, %125, %129, %133 in 1 : vector<1x32xf32>, vector<1x32xf32>, vector<1x32xf32>, vector<1x32xf32>, vector<1x32xf32>, vector<1x32xf32>, vector<1x32xf32>, vector<1x32xf32>, vector<1x32xf32>, vector<1x32xf32>, vector<1x32xf32>, vector<1x32xf32>, vector<1x32xf32>, vector<1x32xf32>, vector<1x32xf32>, vector<1x32xf32> -> vector<1x512xf32>
    %136 = tpu.concatenate %134, %135 in 1 : vector<1x512xf32>, vector<1x512xf32> -> vector<1x1024xf32>
    %cst = arith.constant 0.000000e+00 : f32
    %137 = vector.broadcast %cst : f32 to vector<1x1024xf32>
    %138 = arith.cmpf one, %136, %137 : vector<1x1024xf32>
    %cst_1 = arith.constant 0.000000e+00 : f32
    %139 = vector.shape_cast %138 : vector<1x1024xi1> to vector<1x1024xi1>
    %140 = vector.broadcast %139 : vector<1x1024xi1> to vector<8x1024xi1>
    %141 = vector.broadcast %cst_1 : f32 to vector<8x1024xf32>
    %142 = arith.select %140, %4, %141 : vector<8x1024xi1>, vector<8x1024xf32>
    %c0_2 = arith.constant 0 : index
    %c0_3 = arith.constant 0 : index
    %143 = vector.load %arg2[%c0_2, %c0_3] : memref<8x1024xf32, #tpu.memory_space<vmem>>, vector<8x1024xf32>
    tpu.vector_store %arg2[%c0_2, %c0_3], %142 {strides = array<i32>} : memref<8x1024xf32, #tpu.memory_space<vmem>>, vector<8x1024xf32>,
    return
  }
  func.func @transform_0(%arg0: i32) -> (i32, i32) {
    %c0_i32 = arith.constant 0 : i32
    %c0_i32_0 = arith.constant 0 : i32
    return %arg0, %c0_i32 : i32, i32
  }
  func.func @transform_1(%arg0: i32) -> (i32, i32) {
    %c0_i32 = arith.constant 0 : i32
    %c0_i32_0 = arith.constant 0 : i32
    return %arg0, %c0_i32 : i32, i32
  }
}

</mosaic_0001>

<bundles_post_ra>
// kernel: tpu_custom_call.1
= control target key start
LH: loop header
LB: loop body
LE: loop exit
PB: predicated region body
PF: predicated region fallthrough
CT: control target
= control target key end

     0   :  { %6 = vsyncpa [#allocation3], 0  ;;  %s692_s0 = inlined_call_operand.hbm [shape: f32[8,32], index: 0, kind: input, shape index: {}]   ;;  %s693_s1 = inlined_call_operand.hbm [shape: f32[8,1024], index: 1, kind: output, shape index: {}]  }
   0x1   :  { %7 = vsyncpa [#allocation4], 0  ;;  %s494_s6 = smov [#allocation2]   ;;  %s446_s10 = scalar_lea.hbm %s692_s0, 128 }
   0x2   :  { %s14_s7 = sshll.u32 %s494_s6, 4  ;;  %p447_p0 = scmp.ne.s32.totalorder %s692_s0, %s446_s10  ;;  %s15_s7 = int_to_ptr.vmem [resolvable:$true] %s14_s7 }
   0x3   :  { %p450_p1 = scmp.lt.u32.totalorder %s446_s10, %s692_s0 }
   0x5   :  { %p452_p2 = pnand %p450_p1, %p447_p0 }
   0x7   :  { %455 = shalt.err (!%p452_p2)
}
   0x8   :  { %s456_s15 = scalar_lea.vmem %s15_s7, 128  ;;  %p461_p4 = scmp.lt.s32.totalorder %s15_s7, %s15_s7 }
   0x9   :  { %p457_p3 = scmp.ne.s32.totalorder %s15_s7, %s456_s15  ;;  %p462_p5 = scmp.lt.s32.totalorder %s456_s15, %s456_s15 }
   0xb   :  { %p463_p6 = por %p462_p5, %p461_p4 }
   0xd   :  { %p464_p7 = pnand %p463_p6, %p457_p3 }
   0xf   :  { %467 = shalt.err (!%p464_p7)
}
  0x10   :  { %17 = dma.hbm_to_vmem [thread:$0]  %s692_s0, 128, %s15_s7, [#allocation3]   ;;  %v40_v0 = vlaneseq }
  0x11   :  { %490 = dma.done.wait [#allocation3], 128  }
  0x12   :  { %491 = vsyncadd [#allocation3], 4294967168  ;;  %v524_v1 = vand.u32 127, %v40_v0  ;;  %v495_v2 = vmov 0.0   ;;  %s496_s0 = smov 32   ;;  %v21_v28 = vld [vmem:[#allocation2] sm:$0xff] }
  0x13   :  { %s497_s18 = smov 64   ;;  %v22_v37 = vmul.f32 1.442695, %v21_v28  ;;  %s498_s19 = smov 96   ;;  %v275_v56 = vshrl.u32 %v40_v0, 7 }
  0x14   :  { %vm93_vm0 = vcmp.eq.s32.totalorder %v524_v1, 17  ;;  %vm105_vm1 = vcmp.eq.s32.totalorder %v524_v1, 21  ;;  %vm45_vm2 = vcmp.eq.s32.totalorder %v524_v1, 1  ;;  %vm57_vm3 = vcmp.eq.s32.totalorder %v524_v1, 5  ;;  %s500_s20 = smov [#allocation5]  }
  0x15   :  { %v362_v3 = vsel %vm93_vm0, 1.0, %v495_v2  ;;  %v366_v4 = vsel %vm105_vm1, 1.0, %v495_v2  ;;  %v346_v5 = vsel %vm45_vm2, 1.0, %v495_v2  ;;  %v350_v6 = vsel %vm57_vm3, 1.0, %v495_v2  ;;  %s336_s21 = sshll.u32 %s500_s20, 4  ;;  %s337_s21 = int_to_ptr.vmem [resolvable:$true] %s336_s21 }
  0x16   :  { %v394_v7 = vpack.i.bf16 %v366_v4, %v362_v3  ;;  %v384_v8 = vpack.i.bf16 %v350_v6, %v346_v5  ;;  %vm117_vm4 = vcmp.eq.s32.totalorder %v524_v1, 25  ;;  %vm129_vm5 = vcmp.eq.s32.totalorder %v524_v1, 29  ;;  %s468_s22 = scalar_lea.vmem %s337_s21, 1024  ;;  %p473_p9 = scmp.lt.s32.totalorder %s337_s21, %s337_s21 }
  0x17   :  { %v370_v9 = vsel %vm117_vm4, 1.0, %v495_v2  ;;  %v374_v10 = vsel %vm129_vm5, 1.0, %v495_v2  ;;  %vm69_vm6 = vcmp.eq.s32.totalorder %v524_v1, 9  ;;  %vm81_vm7 = vcmp.eq.s32.totalorder %v524_v1, 13  ;;  %p469_p8 = scmp.ne.s32.totalorder %s337_s21, %s468_s22  ;;  %p474_p10 = scmp.lt.s32.totalorder %s468_s22, %s468_s22 }
  0x18   :  { %395 = vrot.lane.b32.xlu1 %v394_v7, %s496_s0  ;;  %385 = vrot.lane.b32.xlu0 %v384_v8, %s496_s0  ;;  %v399_v11 = vpack.i.bf16 %v374_v10, %v370_v9  ;;  %v354_v12 = vsel %vm69_vm6, 1.0, %v495_v2  ;;  %v358_v13 = vsel %vm81_vm7, 1.0, %v495_v2  ;;  %vm72_vm8 = vcmp.eq.s32.totalorder %v524_v1, 10 }
  0x19   :  { %v389_v14 = vpack.i.bf16 %v358_v13, %v354_v12  ;;  %v355_v15 = vsel %vm72_vm8, 1.0, %v495_v2  ;;  %vm84_vm9 = vcmp.eq.s32.totalorder %v524_v1, 14  ;;  %vm48_vm10 = vcmp.eq.s32.totalorder %v524_v1, 2  ;;  %p475_p11 = por %p474_p10, %p473_p9 }
  0x1a   :  { %v359_v16 = vsel %vm84_vm9, 1.0, %v495_v2  ;;  %v347_v17 = vsel %vm48_vm10, 1.0, %v495_v2  ;;  %vm60_vm11 = vcmp.eq.s32.totalorder %v524_v1, 6  ;;  %vm120_vm12 = vcmp.eq.s32.totalorder %v524_v1, 26 }
  0x1b   :  { %v409_v18 = vpack.i.bf16 %v359_v16, %v355_v15  ;;  %v351_v19 = vsel %vm60_vm11, 1.0, %v495_v2  ;;  %vm132_vm13 = vcmp.eq.s32.totalorder %v524_v1, 30  ;;  %v371_v21 = vsel %vm120_vm12, 1.0, %v495_v2  ;;  %p476_p12 = pnand %p475_p11, %p469_p8 }
  0x1c   :  { %400 = vrot.lane.b32.xlu1 %v399_v11, %s496_s0  ;;  %390 = vrot.lane.b32.xlu0 %v389_v14, %s496_s0  ;;  %v404_v20 = vpack.i.bf16 %v351_v19, %v347_v17  ;;  %vm96_vm14 = vcmp.eq.s32.totalorder %v524_v1, 18  ;;  %vm108_vm15 = vcmp.eq.s32.totalorder %v524_v1, 22  ;;  %v375_v22 = vsel %vm132_vm13, 1.0, %v495_v2 }
  0x1d   :  { %v363_v23 = vsel %vm96_vm14, 1.0, %v495_v2  ;;  %v367_v24 = vsel %vm108_vm15, 1.0, %v495_v2  ;;  %vm75_vm0 = vcmp.eq.s32.totalorder %v524_v1, 11  ;;  %vm87_vm1 = vcmp.eq.s32.totalorder %v524_v1, 15 }
  0x1e   :  { %v356_v25 = vsel %vm75_vm0, 1.0, %v495_v2  ;;  %vm51_vm2 = vcmp.eq.s32.totalorder %v524_v1, 3  ;;  %v360_v26 = vsel %vm87_vm1, 1.0, %v495_v2  ;;  %vm63_vm3 = vcmp.eq.s32.totalorder %v524_v1, 7 }
  0x1f   :  { %v348_v27 = vsel %vm51_vm2, 1.0, %v495_v2  ;;  %vm123_vm4 = vcmp.eq.s32.totalorder %v524_v1, 27  ;;  %v419_v29 = vpack.i.bf16 %v375_v22, %v371_v21  ;;  %v414_v30 = vpack.i.bf16 %v367_v24, %v363_v23 }
  0x20   :  { %410 = vrot.lane.b32.xlu1 %v409_v18, %s497_s18  ;;  %405 = vrot.lane.b32.xlu0 %v404_v20, %s497_s18  ;;  %v352_v31 = vsel %vm63_vm3, 1.0, %v495_v2  ;;  %vm135_vm5 = vcmp.eq.s32.totalorder %v524_v1, 31  ;;  %v429_v32 = vpack.i.bf16 %v360_v26, %v356_v25  ;;  %v372_v33 = vsel %vm123_vm4, 1.0, %v495_v2 }
  0x21   :  { %vm99_vm6 = vcmp.eq.s32.totalorder %v524_v1, 19  ;;  %vm111_vm7 = vcmp.eq.s32.totalorder %v524_v1, 23  ;;  %v424_v34 = vpack.i.bf16 %v352_v31, %v348_v27  ;;  %v376_v35 = vsel %vm135_vm5, 1.0, %v495_v2 }
  0x22   :  { %v364_v36 = vsel %vm99_vm6, 1.0, %v495_v2  ;;  %v368_v38 = vsel %vm111_vm7, 1.0, %v495_v2  ;;  %vm90_vm8 = vcmp.eq.s32.totalorder %v524_v1, 16  ;;  %vm102_vm9 = vcmp.eq.s32.totalorder %v524_v1, 20 }
  0x23   :  { %vm42_vm10 = vcmp.eq.s32.totalorder %v524_v1, 0  ;;  %444 = vpow2.f32 %v22_v37  ;;  %v361_v39 = vsel %vm90_vm8, 1.0, %v495_v2  ;;  %v365_v40 = vsel %vm102_vm9, 1.0, %v495_v2 }
  0x24   :  { %420 = vrot.lane.b32.xlu1 %v419_v29, %s497_s18  ;;  %415 = vrot.lane.b32.xlu0 %v414_v30, %s497_s18  ;;  %v345_v41 = vsel %vm42_vm10, 1.0, %v495_v2  ;;  %vm54_vm11 = vcmp.eq.s32.totalorder %v524_v1, 4  ;;  %vm114_vm12 = vcmp.eq.s32.totalorder %v524_v1, 24  ;;  %vm126_vm13 = vcmp.eq.s32.totalorder %v524_v1, 28 }
  0x25   :  { %vm66_vm14 = vcmp.eq.s32.totalorder %v524_v1, 8  ;;  %v349_v42 = vsel %vm54_vm11, 1.0, %v495_v2  ;;  %v369_v43 = vsel %vm114_vm12, 1.0, %v495_v2  ;;  %v373_v44 = vsel %vm126_vm13, 1.0, %v495_v2 }
  0x26   :  { %v353_v45 = vsel %vm66_vm14, 1.0, %v495_v2  ;;  %vm78_vm15 = vcmp.eq.s32.totalorder %v524_v1, 12  ;;  %v439_v46 = vpack.i.bf16 %v376_v35, %v372_v33  ;;  %v434_v47 = vpack.i.bf16 %v368_v38, %v364_v36 }
  0x27   :  { %v357_v48 = vsel %vm78_vm15, 1.0, %v495_v2  ;;  %vm34_vm0 = vcmask 261120   ;;  %vm36_vm1 = vcmask 523264   ;;  %vm38_vm2 = vcmask 785408  }
  0x28   :  { %430 = vrot.lane.b32.xlu1 %v429_v32, %s498_s19  ;;  %425 = vrot.lane.b32.xlu0 %v424_v34, %s498_s19  ;;  %v606_v8 = vsub.s32 0, %v275_v56  ;;  %v499_v36 = vmov 0  }
  0x2c   :  { %440 = vrot.lane.b32.xlu1 %v439_v46, %s498_s19  ;;  %435 = vrot.lane.b32.xlu0 %v434_v47, %s498_s19 }
  0x2d   :  { %v598_v49 = vpop.eup %444 }
  0x30   :  { %25 = vrot.lane.b32.xlu0 %v598_v49, %s496_s0  ;;  %28 = vrot.lane.b32.xlu1 %v598_v49, %s497_s18 }
  0x34   :  { %31 = vrot.lane.b32.xlu0 %v598_v49, %s498_s19 }
  0x8a   :  { %v396_v50 = vpop.permute.xlu1 %395  ;;  %v386_v51 = vpop.permute.xlu0 %385 }
  0x8b   :  { %v398_v57 = vunpack.i.h.bf16 %v396_v50  ;;  %v397_v58 = vunpack.i.l.bf16 %v396_v50  ;;  %v388_v59 = vunpack.i.h.bf16 %v386_v51  ;;  %v387_v60 = vunpack.i.l.bf16 %v386_v51 }
  0x8d   :  { %v249_v0 = vsel %vm34_vm0, %v365_v40, %v398_v57  ;;  %v246_v9 = vsel %vm34_vm0, %v361_v39, %v397_v58  ;;  %v189_v10 = vsel %vm34_vm0, %v349_v42, %v388_v59  ;;  %v186_v11 = vsel %vm34_vm0, %v345_v41, %v387_v60 }
  0x8e   :  { %v401_v52 = vpop.permute.xlu1 %400  ;;  %v391_v53 = vpop.permute.xlu0 %390 }
  0x8f   :  { %v403_v61 = vunpack.i.h.bf16 %v401_v52  ;;  %v402_v62 = vunpack.i.l.bf16 %v401_v52  ;;  %v393_v63 = vunpack.i.h.bf16 %v391_v53  ;;  %v392_v1 = vunpack.i.l.bf16 %v391_v53 }
  0x91   :  { %v255_v12 = vsel %vm34_vm0, %v373_v44, %v403_v61  ;;  %v252_v13 = vsel %vm34_vm0, %v369_v43, %v402_v62  ;;  %v195_v14 = vsel %vm34_vm0, %v357_v48, %v393_v63  ;;  %v192_v15 = vsel %vm34_vm0, %v353_v45, %v392_v1 }
  0x92   :  { %v411_v54 = vpop.permute.xlu1 %410  ;;  %v406_v55 = vpop.permute.xlu0 %405 }
  0x93   :  { %v413_v2 = vunpack.i.h.bf16 %v411_v54  ;;  %v412_v3 = vunpack.i.l.bf16 %v411_v54  ;;  %v408_v4 = vunpack.i.h.bf16 %v406_v55  ;;  %v407_v5 = vunpack.i.l.bf16 %v406_v55 }
  0x95   :  { %v193_v16 = vsel %vm36_vm1, %v192_v15, %v412_v3  ;;  %v196_v17 = vsel %vm36_vm1, %v195_v14, %v413_v2  ;;  %v187_v18 = vsel %vm36_vm1, %v186_v11, %v407_v5  ;;  %v190_v19 = vsel %vm36_vm1, %v189_v10, %v408_v4 }
  0x96   :  { %v421_v6 = vpop.permute.xlu1 %420  ;;  %v416_v7 = vpop.permute.xlu0 %415 }
  0x97   :  { %v423_v26 = vunpack.i.h.bf16 %v421_v6  ;;  %v422_v27 = vunpack.i.l.bf16 %v421_v6  ;;  %v418_v28 = vunpack.i.h.bf16 %v416_v7  ;;  %v417_v29 = vunpack.i.l.bf16 %v416_v7 }
  0x99   :  { %v253_v50 = vsel %vm36_vm1, %v252_v13, %v422_v27  ;;  %v256_v51 = vsel %vm36_vm1, %v255_v12, %v423_v26  ;;  %v250_v52 = vsel %vm36_vm1, %v249_v0, %v418_v28  ;;  %v247_v53 = vsel %vm36_vm1, %v246_v9, %v417_v29 }
  0x9a   :  { %v431_v20 = vpop.permute.xlu1 %430  ;;  %v426_v21 = vpop.permute.xlu0 %425 }
  0x9b   :  { %v433_v22 = vunpack.i.h.bf16 %v431_v20  ;;  %v432_v23 = vunpack.i.l.bf16 %v431_v20  ;;  %v428_v24 = vunpack.i.h.bf16 %v426_v21  ;;  %v427_v25 = vunpack.i.l.bf16 %v426_v21 }
  0x9d   :  { %v194_v30 = vsel %vm38_vm2, %v193_v16, %v432_v23  ;;  %v197_v31 = vsel %vm38_vm2, %v196_v17, %v433_v22  ;;  %v188_v32 = vsel %vm38_vm2, %v187_v18, %v427_v25  ;;  %v191_v33 = vsel %vm38_vm2, %v190_v19, %v428_v24 }
  0x9e   :  { %vm260_vm3 = vcmp.ne.f32.partialorder %v194_v30, 0.0  ;;  %vm261_vm4 = vcmp.ne.f32.partialorder %v197_v31, 0.0  ;;  %vm258_vm5 = vcmp.ne.f32.partialorder %v188_v32, 0.0  ;;  %vm259_vm6 = vcmp.ne.f32.partialorder %v191_v33, 0.0  ;;  %v441_v34 = vpop.permute.xlu1 %440  ;;  %v436_v35 = vpop.permute.xlu0 %435 }
  0x9f   :  { %v268_v37 = vsel %vm260_vm3, 1, %v499_v36  ;;  %v269_v38 = vsel %vm261_vm4, 1, %v499_v36  ;;  %v266_v39 = vsel %vm258_vm5, 1, %v499_v36  ;;  %v267_v40 = vsel %vm259_vm6, 1, %v499_v36 }
  0xa0   :  { %v285_v41 = vrot.slane %v268_v37, %v606_v8  ;;  %v289_v42 = vrot.slane %v269_v38, %v606_v8  ;;  %v277_v43 = vrot.slane %v266_v39, %v606_v8  ;;  %v281_v44 = vrot.slane %v267_v40, %v606_v8 }
  0xa1   :  { %v443_v45 = vunpack.i.h.bf16 %v441_v34  ;;  %v442_v46 = vunpack.i.l.bf16 %v441_v34  ;;  %v438_v47 = vunpack.i.h.bf16 %v436_v35  ;;  %v437_v48 = vunpack.i.l.bf16 %v436_v35 }
  0xa2   :  { %v26_v54 = vpop.permute.xlu0 %25  ;;  %v29_v4 = vpop.permute.xlu1 %28  ;;  %vm642_vm11 = vcmp.eq.s32.totalorder %v285_v41, 1  ;;  %vm306_vm3 = vcmp.eq.s32.totalorder %v277_v43, 1  ;;  %vm307_vm4 = vcmp.eq.s32.totalorder %v281_v44, 1 }
  0xa3   :  { %v254_v55 = vsel %vm38_vm2, %v253_v50, %v442_v46  ;;  %v257_v56 = vsel %vm38_vm2, %v256_v51, %v443_v45  ;;  %v248_v57 = vsel %vm38_vm2, %v247_v53, %v437_v48  ;;  %v251_v58 = vsel %vm38_vm2, %v250_v52, %v438_v47 }
  0xa4   :  { %vm264_vm7 = vcmp.ne.f32.partialorder %v254_v55, 0.0  ;;  %vm265_vm8 = vcmp.ne.f32.partialorder %v257_v56, 0.0  ;;  %vm262_vm9 = vcmp.ne.f32.partialorder %v248_v57, 0.0  ;;  %vm263_vm10 = vcmp.ne.f32.partialorder %v251_v58, 0.0 }
  0xa5   :  { %v272_v59 = vsel %vm264_vm7, 1, %v499_v36  ;;  %v273_v60 = vsel %vm265_vm8, 1, %v499_v36  ;;  %v270_v61 = vsel %vm262_vm9, 1, %v499_v36  ;;  %v271_v62 = vsel %vm263_vm10, 1, %v499_v36 }
  0xa6   :  { %v301_v63 = vrot.slane %v272_v59, %v606_v8  ;;  %v305_v1 = vrot.slane %v273_v60, %v606_v8  ;;  %v293_v2 = vrot.slane %v270_v61, %v606_v8  ;;  %v297_v3 = vrot.slane %v271_v62, %v606_v8  ;;  %v32_v6 = vpop.permute.xlu0 %31 }
  0xa7   :  { %v35_v5 = vsel %vm34_vm0, %v598_v49, %v26_v54  ;;  %vm663_vm0 = vcmp.eq.s32.totalorder %v289_v42, 1 }
  0xa8   :  { %vm646_vm12 = vcmp.eq.s32.totalorder %v301_v63, 1  ;;  %vm650_vm13 = vcmp.eq.s32.totalorder %v305_v1, 1  ;;  %vm654_vm14 = vcmp.eq.s32.totalorder %v293_v2, 1  ;;  %vm658_vm15 = vcmp.eq.s32.totalorder %v297_v3, 1 }
  0xa9   :  { %v37_v10 = vsel %vm36_vm1, %v35_v5, %v29_v4 }
  0xaa   :  { %v39_v12 = vsel %vm38_vm2, %v37_v10, %v32_v6 }
  0xab   :  { %v314_v13 = vsel %vm306_vm3, %v39_v12, 0.0  ;;  %v315_v14 = vsel %vm307_vm4, %v39_v12, 0.0  ;;  %v316_v15 = vsel %vm642_vm11, %v39_v12, 0.0  ;;  %v317_v16 = vsel %vm663_vm0, %v39_v12, 0.0 }
  0xac   :  { %v318_v17 = vsel %vm654_vm14, %v39_v12, 0.0  ;;  %v319_v18 = vsel %vm658_vm15, %v39_v12, 0.0  ;;  %v320_v19 = vsel %vm646_vm12, %v39_v12, 0.0  ;;  %v321_v20 = vsel %vm650_vm13, %v39_v12, 0.0  ;;  %322 = vst [vmem:[#allocation5] sm:$0xff] %v314_v13  ;;  %323 = vst [vmem:[#allocation5 + $0x8] sm:$0xff] %v315_v14 }
  0xad   :  { %324 = vst [vmem:[#allocation5 + $0x10] sm:$0xff] %v316_v15  ;;  %325 = vst [vmem:[#allocation5 + $0x18] sm:$0xff] %v317_v16 }
  0xae   :  { %326 = vst [vmem:[#allocation5 + $0x20] sm:$0xff] %v318_v17  ;;  %327 = vst [vmem:[#allocation5 + $0x28] sm:$0xff] %v319_v18 }
  0xaf   :  { %328 = vst [vmem:[#allocation5 + $0x30] sm:$0xff] %v320_v19  ;;  %329 = vst [vmem:[#allocation5 + $0x38] sm:$0xff] %v321_v20 }
  0xb0   :  { %479 = shalt.err (!%p476_p12)
}
  0xb1   :  { %s480_s25 = scalar_lea.hbm %s693_s1, 1024 }
  0xb2   :  { %p481_p13 = scmp.ne.s32.totalorder %s693_s1, %s480_s25  ;;  %p484_p0 = scmp.lt.u32.totalorder %s480_s25, %s693_s1 }
  0xb4   :  { %p486_p1 = pnand %p484_p0, %p481_p13 }
  0xb6   :  { %489 = shalt.err (!%p486_p1)
}
  0xb7   :  { %339 = dma.vmem_to_hbm [thread:$0]  %s337_s21, 1024, %s693_s1, [#allocation4]  }
  0xb8   :  { %492 = dma.done.wait [#allocation4], 1024  }
  0xb9   :  { %493 = vsyncadd [#allocation4], 4294966272 }
  0xba   :  { %343 = vsyncpa [#allocation3], 1 }
  0xbb   :  { %344 = vsyncpa [#allocation4], 1 }

</bundles_post_ra>
